<compile_context>
chip_gen: v5e
topology: v5e:2x2
jax: 0.10.0
libtpu: 0.0.40
codegen_flags: <defaults>
</compile_context>

<pallas_src>
import functools

import jax
import jax.numpy as jnp
from jax import lax
from jax.experimental import pallas as pl
from jax.experimental.pallas import tpu as pltpu


def _round_up(x, m):
    return ((x + m - 1) // m) * m


# ----------------------------------------------------------------------------
# Pallas kernel: K-tiled matmul, f32 accumulator, bias + LeakyReLU epilogue
# ----------------------------------------------------------------------------
def _fused_matmul_kernel(p_ref, w_ref, b_ref, o_ref, acc_ref, *,
                         negative_slope, apply_act):
    k = pl.program_id(1)

    @pl.when(k == 0)
    def _():
        acc_ref[...] = jnp.zeros_like(acc_ref)

    acc_ref[...] += jnp.dot(p_ref[...], w_ref[...],
                            preferred_element_type=jnp.float32)

    @pl.when(k == pl.num_programs(1) - 1)
    def _():
        acc = acc_ref[...] + b_ref[...]                 # BN shift (or 0)
        if apply_act:
            acc = jnp.where(acc >= 0.0, acc, negative_slope * acc)
        o_ref[...] = acc.astype(o_ref.dtype)


def fused_conv_matmul(patches, w_mat, bias, *, negative_slope=0.2,
                      apply_act=True):
    """patches: (M, K), w_mat: (K, N) (BN scale pre-folded), bias: (N,).

    Lane-dense (128-padded) K / N, bf16 MXU operands, f32 accumulation,
    K-tiled reduction with a VMEM accumulator.
    """
    M, K = patches.shape
    K2, N = w_mat.shape
    assert K == K2

    # Lane-dense padding: zeros are numerically transparent.
    Kp = _round_up(K, 128)
    Np = _round_up(N, 128)
    # Reduction tile (always divides Kp).
    TK = 512 if Kp % 512 == 0 else (256 if Kp % 256 == 0 else 128)
    # M tile: multiple of 16 (bf16 sublane packing); pad Mp to a TM multiple.
    Mp = _round_up(M, 16)
    TM = Mp if Mp <= 256 else 256
    Mp = _round_up(Mp, TM)

    patches_p = jnp.zeros((Mp, Kp), jnp.bfloat16).at[:M, :K].set(
        patches.astype(jnp.bfloat16))
    w_p = jnp.zeros((Kp, Np), jnp.bfloat16).at[:K, :N].set(
        w_mat.astype(jnp.bfloat16))
    b_p = jnp.zeros((1, Np), jnp.float32).at[0, :N].set(
        bias.astype(jnp.float32))

    out = pl.pallas_call(
        functools.partial(_fused_matmul_kernel,
                          negative_slope=negative_slope,
                          apply_act=apply_act),
        out_shape=jax.ShapeDtypeStruct((Mp, Np), jnp.float32),
        grid=(Mp // TM, Kp // TK),
        in_specs=[
            pl.BlockSpec((TM, TK), lambda i, k: (i, k)),
            pl.BlockSpec((TK, Np), lambda i, k: (k, 0)),
            pl.BlockSpec((1, Np), lambda i, k: (0, 0)),
        ],
        out_specs=pl.BlockSpec((TM, Np), lambda i, k: (i, 0)),
        scratch_shapes=[pltpu.VMEM((TM, Np), jnp.float32)],
        compiler_params=pltpu.CompilerParams(
            dimension_semantics=("parallel", "arbitrary")),
    )(patches_p, w_p, b_p)
    return out[:M, :N]


# ----------------------------------------------------------------------------
# Glue: channels-last im2col + conv wrapper
# ----------------------------------------------------------------------------
def im2col_nhwc(x, k, stride, pad):
    """x: (B, H, W, C) -> patches (B*Ho*Wo, k*k*C) with K ordered (kh, kw, c)."""
    B, H, W, C = x.shape
    if pad > 0:
        x = jnp.pad(x, ((0, 0), (pad, pad), (pad, pad), (0, 0)))
    Hp, Wp = x.shape[1], x.shape[2]
    Ho = (Hp - k) // stride + 1
    Wo = (Wp - k) // stride + 1
    cols = []
    for i in range(k):
        for j in range(k):
            cols.append(x[:, i:i + stride * Ho:stride,
                          j:j + stride * Wo:stride, :])        # (B, Ho, Wo, C)
    # Channels already last: a single concat, no per-layer layout transpose.
    # TODO(synk): the patch matrix is still materialized by XLA; full in-kernel
    # halo/im2col fusion (scalar-prefetch gather) is not implemented.
    patches = jnp.concatenate(cols, axis=-1)
    return patches.reshape(B * Ho * Wo, k * k * C), Ho, Wo


def conv2d_pallas_nhwc(x, w, *, stride, padding, scale=None, shift=None,
                       apply_act=True, negative_slope=0.2):
    """Conv2d(bias=False) [+ BN(eval)] [+ LeakyReLU(0.2)], NHWC in/out.

    `w` is PyTorch OIHW (Cout, Cin, kh, kw).  BN scale is folded into the
    weight columns; BN shift is added as a bias row in the kernel epilogue.
    """
    B, H, W, C = x.shape
    Cout, Cin, kh, kw = w.shape
    assert C == Cin and kh == kw
    patches, Ho, Wo = im2col_nhwc(x, kh, stride, padding)
    # (Cout, Cin, kh, kw) -> (kh, kw, Cin, Cout) -> (K, Cout): matches patch K order.
    w_mat = w.transpose(2, 3, 1, 0).reshape(kh * kw * Cin, Cout)
    if scale is not None:
        w_mat = w_mat * scale[None, :]
    bias = shift if shift is not None else jnp.zeros((Cout,), jnp.float32)
    out = fused_conv_matmul(patches, w_mat, bias,
                            negative_slope=negative_slope, apply_act=apply_act)
    return out.reshape(B, Ho, Wo, Cout)


# ----------------------------------------------------------------------------
# Encoder (input_layers -> extra_layers -> pyramid_features -> final conv)
# ----------------------------------------------------------------------------
def init_params(key, *, input_size, latent_vec_size, num_input_channels,
                n_features, extra_layers=0, eps=1e-5):
    assert input_size % 16 == 0
    keys = iter(jax.random.split(key, 64))
    params = {}

    def bn_scale_shift(k, c):
        k1, k2, k3, k4 = jax.random.split(k, 4)
        gamma = 1.0 + 0.1 * jax.random.normal(k1, (c,), jnp.float32)
        beta = 0.1 * jax.random.normal(k2, (c,), jnp.float32)
        mean = 0.1 * jax.random.normal(k3, (c,), jnp.float32)
        var = 0.5 + jnp.abs(jax.random.normal(k4, (c,), jnp.float32))
        scale = gamma / jnp.sqrt(var + eps)
        shift = beta - mean * scale
        return scale, shift

    # initial-conv: Conv2d(Cin, nf, 4, 2, 1, bias=False) + LeakyReLU(0.2)
    params["w_initial"] = 0.02 * jax.random.normal(
        next(keys), (n_features, num_input_channels, 4, 4), jnp.float32)

    # extra layers (3x3 s1 p1 conv + BN + LeakyReLU), default 0
    params["extra"] = []
    for _ in range(extra_layers):
        w = 0.02 * jax.random.normal(
            next(keys), (n_features, n_features, 3, 3), jnp.float32)
        params["extra"].append((w,) + bn_scale_shift(next(keys), n_features))

    # pyramid layers (4x4 s2 p1 conv + BN + LeakyReLU)
    params["pyramid"] = []
    size = input_size // 2
    nf = n_features
    while size > 4:
        w = 0.02 * jax.random.normal(
            next(keys), (2 * nf, nf, 4, 4), jnp.float32)
        params["pyramid"].append((w,) + bn_scale_shift(next(keys), 2 * nf))
        nf *= 2
        size //= 2

    # final conv: Conv2d(nf, latent, 4, 1, 0, bias=False)
    params["w_final"] = 0.02 * jax.random.normal(
        next(keys), (latent_vec_size, nf, 4, 4), jnp.float32)
    return params


def encoder_forward(x, params):
    # One NCHW -> NHWC transpose at the input; the network stays channels-last.
    out = jnp.transpose(x, (0, 2, 3, 1))

    # input_layers
    out = conv2d_pallas_nhwc(out, params["w_initial"], stride=2, padding=1,
                             apply_act=True)
    # extra_layers
    # TODO(synk): BatchNorm is fused with eval-mode running statistics;
    # PyTorch training-mode batch statistics are not reproduced here.
    for w, scale, shift in params["extra"]:
        out = conv2d_pallas_nhwc(out, w, stride=1, padding=1,
                                 scale=scale, shift=shift, apply_act=True)
    # pyramid_features
    for w, scale, shift in params["pyramid"]:
        out = conv2d_pallas_nhwc(out, w, stride=2, padding=1,
                                 scale=scale, shift=shift, apply_act=True)
    # final_conv_layer
    out = conv2d_pallas_nhwc(out, params["w_final"], stride=1, padding=0,
                             apply_act=False)

    # One NHWC -> NCHW transpose at the output.
    return jnp.transpose(out, (0, 3, 1, 2))


# ----------------------------------------------------------------------------
# Pure-JAX reference (f32 lax.conv, NCHW) for correctness checking
# ----------------------------------------------------------------------------
def ref_forward(x, params):
    def conv(x, w, s, p):
        return lax.conv_general_dilated(
            x, w, (s, s), [(p, p), (p, p)],
            dimension_numbers=("NCHW", "OIHW", "NCHW"))

    def lrelu(x):
        return jnp.where(x >= 0, x, 0.2 * x)

    out = lrelu(conv(x, params["w_initial"], 2, 1))
    for w, scale, shift in params["extra"]:
        out = conv(out, w, 1, 1)
        out = out * scale[None, :, None, None] + shift[None, :, None, None]
        out = lrelu(out)
    for w, scale, shift in params["pyramid"]:
        out = conv(out, w, 2, 1)
        out = out * scale[None, :, None, None] + shift[None, :, None, None]
        out = lrelu(out)
    return conv(out, params["w_final"], 1, 0)


if __name__ == "__main__":
    B, C_in, H = 2, 4, 16
    n_features, latent_vec_size = 8, 32

    params = init_params(jax.random.PRNGKey(0),
                         input_size=H, latent_vec_size=latent_vec_size,
                         num_input_channels=C_in, n_features=n_features,
                         extra_layers=0)
    x = jax.random.normal(jax.random.PRNGKey(1), (B, C_in, H, H), jnp.float32)

    out = jax.jit(encoder_forward)(x, params)
    out = jax.block_until_ready(out)

    ref = ref_forward(x, params)
    assert out.shape == (B, latent_vec_size, 1, 1), out.shape
    # bf16 MXU operands (f32 accumulation) -> loosened tolerance vs f32 reference.
    assert jnp.allclose(out, ref, atol=1e-2, rtol=1e-2), \
        float(jnp.max(jnp.abs(out - ref)))
    print("KERNEL_OK")
</pallas_src>

<mosaic_0001>
module attributes {stable_mosaic.version = 11 : i64} {
  func.func @_fused_matmul_kernel(%arg0: i32, %arg1: i32, %arg2: memref<128x128xbf16, #tpu.memory_space<vmem>>, %arg3: memref<128x128xbf16, #tpu.memory_space<vmem>>, %arg4: memref<1x128xf32, #tpu.memory_space<vmem>>, %arg5: memref<128x128xf32, #tpu.memory_space<vmem>>, %arg6: memref<128x128xf32, #tpu.memory_space<vmem>>) attributes {dimension_semantics = [#tpu.dimension_semantics<parallel>, #tpu.dimension_semantics<arbitrary>], iteration_bounds = array<i64: 1, 1>, scalar_prefetch = 0 : i64, scratch_operands = 1 : i64, tpu.core_type = #tpu.core_type<tc>, window_params = [{transform_indices = @transform_0, window_bounds = array<i64: 128, 128>}, {transform_indices = @transform_1, window_bounds = array<i64: 128, 128>}, {pipeline_mode = #tpu.pipeline_mode<synchronous>, transform_indices = @transform_2, window_bounds = array<i64: 1, 128>}, {transform_indices = @transform_3, window_bounds = array<i64: 128, 128>}]} {
    %c0_i32 = arith.constant 0 : i32
    %0 = arith.cmpi eq, %arg1, %c0_i32 : i32
    %1 = arith.extui %0 : i1 to i32
    %c0_i32_0 = arith.constant 0 : i32
    %2 = arith.cmpi ne, %1, %c0_i32_0 : i32
    scf.if %2 {
      %cst_10 = arith.constant 0.000000e+00 : f32
      %12 = vector.broadcast %cst_10 : f32 to vector<128x128xf32>
      %c0_11 = arith.constant 0 : index
      %c0_12 = arith.constant 0 : index
      %13 = vector.load %arg6[%c0_11, %c0_12] : memref<128x128xf32, #tpu.memory_space<vmem>>, vector<128x128xf32>
      tpu.vector_store %arg6[%c0_11, %c0_12], %12 {strides = array<i32>} : memref<128x128xf32, #tpu.memory_space<vmem>>, vector<128x128xf32>,
    } else {
    }
    %c0 = arith.constant 0 : index
    %c0_1 = arith.constant 0 : index
    %3 = vector.load %arg6[%c0, %c0_1] : memref<128x128xf32, #tpu.memory_space<vmem>>, vector<128x128xf32>
    %c0_2 = arith.constant 0 : index
    %c0_3 = arith.constant 0 : index
    %4 = vector.load %arg2[%c0_2, %c0_3] : memref<128x128xbf16, #tpu.memory_space<vmem>>, vector<128x128xbf16>
    %c0_4 = arith.constant 0 : index
    %c0_5 = arith.constant 0 : index
    %5 = vector.load %arg3[%c0_4, %c0_5] : memref<128x128xbf16, #tpu.memory_space<vmem>>, vector<128x128xbf16>
    %cst = arith.constant dense<0.000000e+00> : vector<128x128xf32>
    %6 = tpu.matmul %4, %5, %cst {dimension_numbers = #tpu.dot_dimension_numbers<[1], [0], [0], [1], [0, 0, 1, 1], [], []>} : vector<128x128xbf16>, vector<128x128xbf16>, vector<128x128xf32> -> vector<128x128xf32>
    %7 = arith.addf %3, %6 : vector<128x128xf32>
    %c0_6 = arith.constant 0 : index
    %c0_7 = arith.constant 0 : index
    %8 = vector.load %arg6[%c0_6, %c0_7] : memref<128x128xf32, #tpu.memory_space<vmem>>, vector<128x128xf32>
    tpu.vector_store %arg6[%c0_6, %c0_7], %7 {strides = array<i32>} : memref<128x128xf32, #tpu.memory_space<vmem>>, vector<128x128xf32>,
    %c0_i32_8 = arith.constant 0 : i32
    %9 = arith.cmpi eq, %arg1, %c0_i32_8 : i32
    %10 = arith.extui %9 : i1 to i32
    %c0_i32_9 = arith.constant 0 : i32
    %11 = arith.cmpi ne, %10, %c0_i32_9 : i32
    scf.if %11 {
      %c0_10 = arith.constant 0 : index
      %c0_11 = arith.constant 0 : index
      %12 = vector.load %arg6[%c0_10, %c0_11] : memref<128x128xf32, #tpu.memory_space<vmem>>, vector<128x128xf32>
      %c0_12 = arith.constant 0 : index
      %c0_13 = arith.constant 0 : index
      %13 = vector.load %arg4[%c0_12, %c0_13] : memref<1x128xf32, #tpu.memory_space<vmem>>, vector<1x128xf32>
      %14 = vector.broadcast %13 : vector<1x128xf32> to vector<128x128xf32>
      %15 = arith.addf %12, %14 : vector<128x128xf32>
      %cst_14 = arith.constant 0.000000e+00 : f32
      %16 = vector.broadcast %cst_14 : f32 to vector<128x128xf32>
      %17 = arith.cmpf oge, %15, %16 : vector<128x128xf32>
      %cst_15 = arith.constant 2.000000e-01 : f32
      %18 = vector.broadcast %cst_15 : f32 to vector<128x128xf32>
      %19 = arith.mulf %18, %15 : vector<128x128xf32>
      %20 = arith.select %17, %15, %19 : vector<128x128xi1>, vector<128x128xf32>
      %c0_16 = arith.constant 0 : index
      %c0_17 = arith.constant 0 : index
      %21 = vector.load %arg5[%c0_16, %c0_17] : memref<128x128xf32, #tpu.memory_space<vmem>>, vector<128x128xf32>
      tpu.vector_store %arg5[%c0_16, %c0_17], %20 {strides = array<i32>} : memref<128x128xf32, #tpu.memory_space<vmem>>, vector<128x128xf32>,
    } else {
    }
    return
  }
  func.func @transform_0(%arg0: i32, %arg1: i32) -> (i32, i32) {
    %c0_i32 = arith.constant 0 : i32
    return %arg0, %arg1 : i32, i32
  }
  func.func @transform_1(%arg0: i32, %arg1: i32) -> (i32, i32) {
    %c0_i32 = arith.constant 0 : i32
    %c0_i32_0 = arith.constant 0 : i32
    return %arg1, %c0_i32 : i32, i32
  }
  func.func @transform_2(%arg0: i32, %arg1: i32) -> (i32, i32) {
    %c0_i32 = arith.constant 0 : i32
    %c0_i32_0 = arith.constant 0 : i32
    %c0_i32_1 = arith.constant 0 : i32
    return %c0_i32, %c0_i32_0 : i32, i32
  }
  func.func @transform_3(%arg0: i32, %arg1: i32) -> (i32, i32) {
    %c0_i32 = arith.constant 0 : i32
    %c0_i32_0 = arith.constant 0 : i32
    return %arg0, %c0_i32 : i32, i32
  }
}

module attributes {stable_mosaic.version = 11 : i64} {
  func.func @_fused_matmul_kernel(%arg0: i32, %arg1: i32, %arg2: memref<32x128xbf16, #tpu.memory_space<vmem>>, %arg3: memref<128x128xbf16, #tpu.memory_space<vmem>>, %arg4: memref<1x128xf32, #tpu.memory_space<vmem>>, %arg5: memref<32x128xf32, #tpu.memory_space<vmem>>, %arg6: memref<32x128xf32, #tpu.memory_space<vmem>>) attributes {dimension_semantics = [#tpu.dimension_semantics<parallel>, #tpu.dimension_semantics<arbitrary>], iteration_bounds = array<i64: 1, 1>, scalar_prefetch = 0 : i64, scratch_operands = 1 : i64, tpu.core_type = #tpu.core_type<tc>, window_params = [{transform_indices = @transform_0, window_bounds = array<i64: 32, 128>}, {transform_indices = @transform_1, window_bounds = array<i64: 128, 128>}, {pipeline_mode = #tpu.pipeline_mode<synchronous>, transform_indices = @transform_2, window_bounds = array<i64: 1, 128>}, {transform_indices = @transform_3, window_bounds = array<i64: 32, 128>}]} {
    %c0_i32 = arith.constant 0 : i32
    %0 = arith.cmpi eq, %arg1, %c0_i32 : i32
    %1 = arith.extui %0 : i1 to i32
    %c0_i32_0 = arith.constant 0 : i32
    %2 = arith.cmpi ne, %1, %c0_i32_0 : i32
    scf.if %2 {
      %cst_10 = arith.constant 0.000000e+00 : f32
      %12 = vector.broadcast %cst_10 : f32 to vector<32x128xf32>
      %c0_11 = arith.constant 0 : index
      %c0_12 = arith.constant 0 : index
      %13 = vector.load %arg6[%c0_11, %c0_12] : memref<32x128xf32, #tpu.memory_space<vmem>>, vector<32x128xf32>
      tpu.vector_store %arg6[%c0_11, %c0_12], %12 {strides = array<i32>} : memref<32x128xf32, #tpu.memory_space<vmem>>, vector<32x128xf32>,
    } else {
    }
    %c0 = arith.constant 0 : index
    %c0_1 = arith.constant 0 : index
    %3 = vector.load %arg6[%c0, %c0_1] : memref<32x128xf32, #tpu.memory_space<vmem>>, vector<32x128xf32>
    %c0_2 = arith.constant 0 : index
    %c0_3 = arith.constant 0 : index
    %4 = vector.load %arg2[%c0_2, %c0_3] : memref<32x128xbf16, #tpu.memory_space<vmem>>, vector<32x128xbf16>
    %c0_4 = arith.constant 0 : index
    %c0_5 = arith.constant 0 : index
    %5 = vector.load %arg3[%c0_4, %c0_5] : memref<128x128xbf16, #tpu.memory_space<vmem>>, vector<128x128xbf16>
    %cst = arith.constant dense<0.000000e+00> : vector<32x128xf32>
    %6 = tpu.matmul %4, %5, %cst {dimension_numbers = #tpu.dot_dimension_numbers<[1], [0], [0], [1], [0, 0, 1, 1], [], []>} : vector<32x128xbf16>, vector<128x128xbf16>, vector<32x128xf32> -> vector<32x128xf32>
    %7 = arith.addf %3, %6 : vector<32x128xf32>
    %c0_6 = arith.constant 0 : index
    %c0_7 = arith.constant 0 : index
    %8 = vector.load %arg6[%c0_6, %c0_7] : memref<32x128xf32, #tpu.memory_space<vmem>>, vector<32x128xf32>
    tpu.vector_store %arg6[%c0_6, %c0_7], %7 {strides = array<i32>} : memref<32x128xf32, #tpu.memory_space<vmem>>, vector<32x128xf32>,
    %c0_i32_8 = arith.constant 0 : i32
    %9 = arith.cmpi eq, %arg1, %c0_i32_8 : i32
    %10 = arith.extui %9 : i1 to i32
    %c0_i32_9 = arith.constant 0 : i32
    %11 = arith.cmpi ne, %10, %c0_i32_9 : i32
    scf.if %11 {
      %c0_10 = arith.constant 0 : index
      %c0_11 = arith.constant 0 : index
      %12 = vector.load %arg6[%c0_10, %c0_11] : memref<32x128xf32, #tpu.memory_space<vmem>>, vector<32x128xf32>
      %c0_12 = arith.constant 0 : index
      %c0_13 = arith.constant 0 : index
      %13 = vector.load %arg4[%c0_12, %c0_13] : memref<1x128xf32, #tpu.memory_space<vmem>>, vector<1x128xf32>
      %14 = vector.broadcast %13 : vector<1x128xf32> to vector<32x128xf32>
      %15 = arith.addf %12, %14 : vector<32x128xf32>
      %cst_14 = arith.constant 0.000000e+00 : f32
      %16 = vector.broadcast %cst_14 : f32 to vector<32x128xf32>
      %17 = arith.cmpf oge, %15, %16 : vector<32x128xf32>
      %cst_15 = arith.constant 2.000000e-01 : f32
      %18 = vector.broadcast %cst_15 : f32 to vector<32x128xf32>
      %19 = arith.mulf %18, %15 : vector<32x128xf32>
      %20 = arith.select %17, %15, %19 : vector<32x128xi1>, vector<32x128xf32>
      %c0_16 = arith.constant 0 : index
      %c0_17 = arith.constant 0 : index
      %21 = vector.load %arg5[%c0_16, %c0_17] : memref<32x128xf32, #tpu.memory_space<vmem>>, vector<32x128xf32>
      tpu.vector_store %arg5[%c0_16, %c0_17], %20 {strides = array<i32>} : memref<32x128xf32, #tpu.memory_space<vmem>>, vector<32x128xf32>,
    } else {
    }
    return
  }
  func.func @transform_0(%arg0: i32, %arg1: i32) -> (i32, i32) {
    %c0_i32 = arith.constant 0 : i32
    return %arg0, %arg1 : i32, i32
  }
  func.func @transform_1(%arg0: i32, %arg1: i32) -> (i32, i32) {
    %c0_i32 = arith.constant 0 : i32
    %c0_i32_0 = arith.constant 0 : i32
    return %arg1, %c0_i32 : i32, i32
  }
  func.func @transform_2(%arg0: i32, %arg1: i32) -> (i32, i32) {
    %c0_i32 = arith.constant 0 : i32
    %c0_i32_0 = arith.constant 0 : i32
    %c0_i32_1 = arith.constant 0 : i32
    return %c0_i32, %c0_i32_0 : i32, i32
  }
  func.func @transform_3(%arg0: i32, %arg1: i32) -> (i32, i32) {
    %c0_i32 = arith.constant 0 : i32
    %c0_i32_0 = arith.constant 0 : i32
    return %arg0, %c0_i32 : i32, i32
  }
}

module attributes {stable_mosaic.version = 11 : i64} {
  func.func @_fused_matmul_kernel(%arg0: i32, %arg1: i32, %arg2: memref<16x256xbf16, #tpu.memory_space<vmem>>, %arg3: memref<256x128xbf16, #tpu.memory_space<vmem>>, %arg4: memref<1x128xf32, #tpu.memory_space<vmem>>, %arg5: memref<16x128xf32, #tpu.memory_space<vmem>>, %arg6: memref<16x128xf32, #tpu.memory_space<vmem>>) attributes {dimension_semantics = [#tpu.dimension_semantics<parallel>, #tpu.dimension_semantics<arbitrary>], iteration_bounds = array<i64: 1, 1>, scalar_prefetch = 0 : i64, scratch_operands = 1 : i64, tpu.core_type = #tpu.core_type<tc>, window_params = [{transform_indices = @transform_0, window_bounds = array<i64: 16, 256>}, {transform_indices = @transform_1, window_bounds = array<i64: 256, 128>}, {pipeline_mode = #tpu.pipeline_mode<synchronous>, transform_indices = @transform_2, window_bounds = array<i64: 1, 128>}, {transform_indices = @transform_3, window_bounds = array<i64: 16, 128>}]} {
    %c0_i32 = arith.constant 0 : i32
    %0 = arith.cmpi eq, %arg1, %c0_i32 : i32
    %1 = arith.extui %0 : i1 to i32
    %c0_i32_0 = arith.constant 0 : i32
    %2 = arith.cmpi ne, %1, %c0_i32_0 : i32
    scf.if %2 {
      %cst_10 = arith.constant 0.000000e+00 : f32
      %12 = vector.broadcast %cst_10 : f32 to vector<16x128xf32>
      %c0_11 = arith.constant 0 : index
      %c0_12 = arith.constant 0 : index
      %13 = vector.load %arg6[%c0_11, %c0_12] : memref<16x128xf32, #tpu.memory_space<vmem>>, vector<16x128xf32>
      tpu.vector_store %arg6[%c0_11, %c0_12], %12 {strides = array<i32>} : memref<16x128xf32, #tpu.memory_space<vmem>>, vector<16x128xf32>,
    } else {
    }
    %c0 = arith.constant 0 : index
    %c0_1 = arith.constant 0 : index
    %3 = vector.load %arg6[%c0, %c0_1] : memref<16x128xf32, #tpu.memory_space<vmem>>, vector<16x128xf32>
    %c0_2 = arith.constant 0 : index
    %c0_3 = arith.constant 0 : index
    %4 = vector.load %arg2[%c0_2, %c0_3] : memref<16x256xbf16, #tpu.memory_space<vmem>>, vector<16x256xbf16>
    %c0_4 = arith.constant 0 : index
    %c0_5 = arith.constant 0 : index
    %5 = vector.load %arg3[%c0_4, %c0_5] : memref<256x128xbf16, #tpu.memory_space<vmem>>, vector<256x128xbf16>
    %cst = arith.constant dense<0.000000e+00> : vector<16x128xf32>
    %6 = tpu.matmul %4, %5, %cst {dimension_numbers = #tpu.dot_dimension_numbers<[1], [0], [0], [1], [0, 0, 1, 1], [], []>} : vector<16x256xbf16>, vector<256x128xbf16>, vector<16x128xf32> -> vector<16x128xf32>
    %7 = arith.addf %3, %6 : vector<16x128xf32>
    %c0_6 = arith.constant 0 : index
    %c0_7 = arith.constant 0 : index
    %8 = vector.load %arg6[%c0_6, %c0_7] : memref<16x128xf32, #tpu.memory_space<vmem>>, vector<16x128xf32>
    tpu.vector_store %arg6[%c0_6, %c0_7], %7 {strides = array<i32>} : memref<16x128xf32, #tpu.memory_space<vmem>>, vector<16x128xf32>,
    %c0_i32_8 = arith.constant 0 : i32
    %9 = arith.cmpi eq, %arg1, %c0_i32_8 : i32
    %10 = arith.extui %9 : i1 to i32
    %c0_i32_9 = arith.constant 0 : i32
    %11 = arith.cmpi ne, %10, %c0_i32_9 : i32
    scf.if %11 {
      %c0_10 = arith.constant 0 : index
      %c0_11 = arith.constant 0 : index
      %12 = vector.load %arg6[%c0_10, %c0_11] : memref<16x128xf32, #tpu.memory_space<vmem>>, vector<16x128xf32>
      %c0_12 = arith.constant 0 : index
      %c0_13 = arith.constant 0 : index
      %13 = vector.load %arg4[%c0_12, %c0_13] : memref<1x128xf32, #tpu.memory_space<vmem>>, vector<1x128xf32>
      %14 = vector.broadcast %13 : vector<1x128xf32> to vector<16x128xf32>
      %15 = arith.addf %12, %14 : vector<16x128xf32>
      %c0_14 = arith.constant 0 : index
      %c0_15 = arith.constant 0 : index
      %16 = vector.load %arg5[%c0_14, %c0_15] : memref<16x128xf32, #tpu.memory_space<vmem>>, vector<16x128xf32>
      tpu.vector_store %arg5[%c0_14, %c0_15], %15 {strides = array<i32>} : memref<16x128xf32, #tpu.memory_space<vmem>>, vector<16x128xf32>,
    } else {
    }
    return
  }
  func.func @transform_0(%arg0: i32, %arg1: i32) -> (i32, i32) {
    %c0_i32 = arith.constant 0 : i32
    return %arg0, %arg1 : i32, i32
  }
  func.func @transform_1(%arg0: i32, %arg1: i32) -> (i32, i32) {
    %c0_i32 = arith.constant 0 : i32
    %c0_i32_0 = arith.constant 0 : i32
    return %arg1, %c0_i32 : i32, i32
  }
  func.func @transform_2(%arg0: i32, %arg1: i32) -> (i32, i32) {
    %c0_i32 = arith.constant 0 : i32
    %c0_i32_0 = arith.constant 0 : i32
    %c0_i32_1 = arith.constant 0 : i32
    return %c0_i32, %c0_i32_0 : i32, i32
  }
  func.func @transform_3(%arg0: i32, %arg1: i32) -> (i32, i32) {
    %c0_i32 = arith.constant 0 : i32
    %c0_i32_0 = arith.constant 0 : i32
    return %arg0, %c0_i32 : i32, i32
  }
}

</mosaic_0001>

<bundles_post_ra>
// kernel: encoder_forward.3
= control target key start
LH: loop header
LB: loop body
LE: loop exit
PB: predicated region body
PF: predicated region fallthrough
CT: control target
= control target key end

     0   :  { %s608_s1 = inlined_call_operand.vmem [shape: bf16[128,128], index: 1, kind: input, shape index: {}]   ;;  %s609_s2 = inlined_call_operand.vmem [shape: f32[1,128], index: 2, kind: input, shape index: {}]   ;;  %s610_s0 = inlined_call_operand.vmem [shape: bf16[128,128], index: 0, kind: input, shape index: {}]   ;;  %s611_s3 = inlined_call_operand.vmem [shape: f32[128,128], index: 3, kind: output, shape index: {}]  }
   0x1   :  { %v445_v0 = vld [vmem:[%s608_s1 + $0x38] sm:$0xff]  ;;  %v444_v1 = vld [vmem:[%s608_s1 + $0x30] sm:$0xff]  ;;  %v443_v2 = vld [vmem:[%s608_s1 + $0x28] sm:$0xff] }
   0x2   :  { %178 = vmatpush.bf16.msra.mxu0 %v445_v0  ;;  %446 = vmatpush.bf16.msra.mxu1 %v445_v0  ;;  %v442_v3 = vld [vmem:[%s608_s1 + $0x20] sm:$0xff]  ;;  %v441_v4 = vld [vmem:[%s608_s1 + $0x18] sm:$0xff]  ;;  %v440_v5 = vld [vmem:[%s608_s1 + $0x10] sm:$0xff] }
   0x3   :  { %447 = vmatpush.bf16.msra.mxu2 %v445_v0  ;;  %448 = vmatpush.bf16.msra.mxu3 %v445_v0  ;;  %v439_v6 = vld [vmem:[%s608_s1 + $0x8] sm:$0xff]  ;;  %v438_v7 = vld [vmem:[%s608_s1] sm:$0xff]  ;;  %v432_v9 = vld [vmem:[%s610_s0 + $0x10] sm:$0xff] }
   0x4   :  { %v430_v8 = vld [vmem:[%s610_s0] sm:$0xff]  ;;  %v436_v11 = vld [vmem:[%s610_s0 + $0x30] sm:$0xff]  ;;  %v431_v12 = vld [vmem:[%s610_s0 + $0x8] sm:$0xff] }
   0x5   :  { %v434_v10 = vld [vmem:[%s610_s0 + $0x20] sm:$0xff]  ;;  %v433_v13 = vld [vmem:[%s610_s0 + $0x18] sm:$0xff]  ;;  %v435_v14 = vld [vmem:[%s610_s0 + $0x28] sm:$0xff] }
   0x6   :  { %179 = vmatpush.bf16.msra.mxu0 %v444_v1  ;;  %449 = vmatpush.bf16.msra.mxu1 %v444_v1  ;;  %v437_v15 = vld [vmem:[%s610_s0 + $0x38] sm:$0xff]  ;;  %v542_v16 = vld [vmem:[%s609_s2] ss:$0 sm:$0xff] }
   0x7   :  { %450 = vmatpush.bf16.msra.mxu2 %v444_v1  ;;  %451 = vmatpush.bf16.msra.mxu3 %v444_v1 }
   0xa   :  { %180 = vmatpush.bf16.msra.mxu0 %v443_v2  ;;  %452 = vmatpush.bf16.msra.mxu1 %v443_v2 }
   0xb   :  { %453 = vmatpush.bf16.msra.mxu2 %v443_v2  ;;  %454 = vmatpush.bf16.msra.mxu3 %v443_v2 }
   0xe   :  { %181 = vmatpush.bf16.msra.mxu0 %v442_v3  ;;  %455 = vmatpush.bf16.msra.mxu1 %v442_v3 }
   0xf   :  { %456 = vmatpush.bf16.msra.mxu2 %v442_v3  ;;  %457 = vmatpush.bf16.msra.mxu3 %v442_v3 }
  0x12   :  { %182 = vmatpush.bf16.msra.mxu0 %v441_v4  ;;  %458 = vmatpush.bf16.msra.mxu1 %v441_v4 }
  0x13   :  { %459 = vmatpush.bf16.msra.mxu2 %v441_v4  ;;  %460 = vmatpush.bf16.msra.mxu3 %v441_v4 }
  0x16   :  { %183 = vmatpush.bf16.msra.mxu0 %v440_v5  ;;  %461 = vmatpush.bf16.msra.mxu1 %v440_v5 }
  0x17   :  { %462 = vmatpush.bf16.msra.mxu2 %v440_v5  ;;  %463 = vmatpush.bf16.msra.mxu3 %v440_v5 }
  0x1a   :  { %184 = vmatpush.bf16.msra.mxu0 %v439_v6  ;;  %464 = vmatpush.bf16.msra.mxu1 %v439_v6 }
  0x1b   :  { %465 = vmatpush.bf16.msra.mxu2 %v439_v6  ;;  %466 = vmatpush.bf16.msra.mxu3 %v439_v6 }
  0x1e   :  { %185 = vmatpush.bf16.msra.mxu0 %v438_v7  ;;  %467 = vmatpush.bf16.msra.mxu1 %v438_v7 }
  0x1f   :  { %468 = vmatpush.bf16.msra.mxu2 %v438_v7  ;;  %469 = vmatpush.bf16.msra.mxu3 %v438_v7 }
  0x21   :  { %186 = vmatmul.bf16.vlgmr.msra.gmra.mxu0 %v430_v8  ;;  %196 = vmatmul.bf16.vlgmr.msra.gmra.mxu1 %v432_v9 }
  0x22   :  { %206 = vmatmul.bf16.vlgmr.msra.gmra.mxu2 %v434_v10  ;;  %216 = vmatmul.bf16.vlgmr.msra.gmra.mxu3 %v436_v11 }
  0x31   :  { %191 = vmatmul.bf16.gmra.mxu0 %v431_v12  ;;  %201 = vmatmul.bf16.gmra.mxu1 %v433_v13 }
  0x32   :  { %211 = vmatmul.bf16.gmra.mxu2 %v435_v14  ;;  %221 = vmatmul.bf16.gmra.mxu3 %v437_v15 }
  0x9e   :  { %v187_v17 = vpop.f32.mrf.mxu0  ;;  %v197_v18 = vpop.f32.mrf.mxu1 }
  0x9f   :  { %v282_v19 = vadd.f32 %v542_v16, %v187_v17  ;;  %v286_v20 = vadd.f32 %v542_v16, %v197_v18 }
  0xa1   :  { %vm298_vm0 = vcmp.ge.f32.partialorder %v282_v19, 0.0  ;;  %v314_v21 = vmul.f32 0.2, %v282_v19  ;;  %vm302_vm1 = vcmp.ge.f32.partialorder %v286_v20, 0.0  ;;  %v318_v22 = vmul.f32 0.2, %v286_v20 }
  0xa3   :  { %v330_v23 = vsel %vm298_vm0, %v282_v19, %v314_v21  ;;  %v334_v24 = vsel %vm302_vm1, %v286_v20, %v318_v22 }
  0xa4   :  { %346 = vst [vmem:[%s611_s3] sm:$0xff] %v330_v23 }
  0xa5   :  { %350 = vst [vmem:[%s611_s3 + $0x20] sm:$0xff] %v334_v24  ;;  %v207_v25 = vpop.f32.mrf.mxu2  ;;  %v217_v26 = vpop.f32.mrf.mxu3 }
  0xa6   :  { %v290_v27 = vadd.f32 %v542_v16, %v207_v25  ;;  %v294_v28 = vadd.f32 %v542_v16, %v217_v26  ;;  %v189_v29 = vpop.f32.mrf.mxu0  ;;  %v199_v30 = vpop.f32.mrf.mxu1 }
  0xa7   :  { %v283_v31 = vadd.f32 %v542_v16, %v189_v29  ;;  %v287_v32 = vadd.f32 %v542_v16, %v199_v30 }
  0xa8   :  { %vm306_vm2 = vcmp.ge.f32.partialorder %v290_v27, 0.0  ;;  %v322_v33 = vmul.f32 0.2, %v290_v27  ;;  %vm310_vm3 = vcmp.ge.f32.partialorder %v294_v28, 0.0  ;;  %v326_v34 = vmul.f32 0.2, %v294_v28 }
  0xa9   :  { %vm299_vm4 = vcmp.ge.f32.partialorder %v283_v31, 0.0  ;;  %v315_v35 = vmul.f32 0.2, %v283_v31  ;;  %vm303_vm5 = vcmp.ge.f32.partialorder %v287_v32, 0.0  ;;  %v319_v36 = vmul.f32 0.2, %v287_v32 }
  0xaa   :  { %v338_v37 = vsel %vm306_vm2, %v290_v27, %v322_v33  ;;  %v342_v38 = vsel %vm310_vm3, %v294_v28, %v326_v34 }
  0xab   :  { %354 = vst [vmem:[%s611_s3 + $0x40] sm:$0xff] %v338_v37  ;;  %v331_v39 = vsel %vm299_vm4, %v283_v31, %v315_v35  ;;  %v335_v40 = vsel %vm303_vm5, %v287_v32, %v319_v36 }
  0xac   :  { %358 = vst [vmem:[%s611_s3 + $0x60] sm:$0xff] %v342_v38 }
  0xad   :  { %347 = vst [vmem:[%s611_s3 + $0x8] sm:$0xff] %v331_v39  ;;  %v209_v41 = vpop.f32.mrf.mxu2  ;;  %v219_v42 = vpop.f32.mrf.mxu3 }
  0xae   :  { %351 = vst [vmem:[%s611_s3 + $0x28] sm:$0xff] %v335_v40  ;;  %v291_v43 = vadd.f32 %v542_v16, %v209_v41  ;;  %v295_v44 = vadd.f32 %v542_v16, %v219_v42  ;;  %v192_v45 = vpop.f32.mrf.mxu0  ;;  %v202_v46 = vpop.f32.mrf.mxu1 }
  0xaf   :  { %v284_v47 = vadd.f32 %v542_v16, %v192_v45  ;;  %v288_v48 = vadd.f32 %v542_v16, %v202_v46 }
  0xb0   :  { %vm307_vm6 = vcmp.ge.f32.partialorder %v291_v43, 0.0  ;;  %v323_v49 = vmul.f32 0.2, %v291_v43  ;;  %vm311_vm7 = vcmp.ge.f32.partialorder %v295_v44, 0.0  ;;  %v327_v50 = vmul.f32 0.2, %v295_v44 }
  0xb1   :  { %vm300_vm8 = vcmp.ge.f32.partialorder %v284_v47, 0.0  ;;  %v316_v51 = vmul.f32 0.2, %v284_v47  ;;  %vm304_vm9 = vcmp.ge.f32.partialorder %v288_v48, 0.0  ;;  %v320_v52 = vmul.f32 0.2, %v288_v48 }
  0xb2   :  { %v339_v53 = vsel %vm307_vm6, %v291_v43, %v323_v49  ;;  %v343_v54 = vsel %vm311_vm7, %v295_v44, %v327_v50 }
  0xb3   :  { %355 = vst [vmem:[%s611_s3 + $0x48] sm:$0xff] %v339_v53  ;;  %v332_v55 = vsel %vm300_vm8, %v284_v47, %v316_v51  ;;  %v336_v56 = vsel %vm304_vm9, %v288_v48, %v320_v52 }
  0xb4   :  { %359 = vst [vmem:[%s611_s3 + $0x68] sm:$0xff] %v343_v54 }
  0xb5   :  { %348 = vst [vmem:[%s611_s3 + $0x10] sm:$0xff] %v332_v55  ;;  %v212_v57 = vpop.f32.mrf.mxu2  ;;  %v222_v58 = vpop.f32.mrf.mxu3 }
  0xb6   :  { %352 = vst [vmem:[%s611_s3 + $0x30] sm:$0xff] %v336_v56  ;;  %v292_v59 = vadd.f32 %v542_v16, %v212_v57  ;;  %v296_v60 = vadd.f32 %v542_v16, %v222_v58  ;;  %v194_v61 = vpop.f32.mrf.mxu0  ;;  %v204_v62 = vpop.f32.mrf.mxu1 }
  0xb7   :  { %v285_v63 = vadd.f32 %v542_v16, %v194_v61  ;;  %v289_v0 = vadd.f32 %v542_v16, %v204_v62 }
  0xb8   :  { %vm308_vm10 = vcmp.ge.f32.partialorder %v292_v59, 0.0  ;;  %v324_v1 = vmul.f32 0.2, %v292_v59  ;;  %vm312_vm11 = vcmp.ge.f32.partialorder %v296_v60, 0.0  ;;  %v328_v2 = vmul.f32 0.2, %v296_v60 }
  0xb9   :  { %vm301_vm12 = vcmp.ge.f32.partialorder %v285_v63, 0.0  ;;  %v317_v3 = vmul.f32 0.2, %v285_v63  ;;  %vm305_vm13 = vcmp.ge.f32.partialorder %v289_v0, 0.0  ;;  %v321_v4 = vmul.f32 0.2, %v289_v0 }
  0xba   :  { %v340_v5 = vsel %vm308_vm10, %v292_v59, %v324_v1  ;;  %v344_v6 = vsel %vm312_vm11, %v296_v60, %v328_v2 }
  0xbb   :  { %356 = vst [vmem:[%s611_s3 + $0x50] sm:$0xff] %v340_v5  ;;  %v333_v7 = vsel %vm301_vm12, %v285_v63, %v317_v3  ;;  %v337_v8 = vsel %vm305_vm13, %v289_v0, %v321_v4 }
  0xbc   :  { %360 = vst [vmem:[%s611_s3 + $0x70] sm:$0xff] %v344_v6 }
  0xbd   :  { %349 = vst [vmem:[%s611_s3 + $0x18] sm:$0xff] %v333_v7  ;;  %v214_v9 = vpop.f32.mrf.mxu2  ;;  %v224_v10 = vpop.f32.mrf.mxu3 }
  0xbe   :  { %353 = vst [vmem:[%s611_s3 + $0x38] sm:$0xff] %v337_v8  ;;  %v293_v11 = vadd.f32 %v542_v16, %v214_v9  ;;  %v297_v12 = vadd.f32 %v542_v16, %v224_v10 }
  0xc0   :  { %vm309_vm14 = vcmp.ge.f32.partialorder %v293_v11, 0.0  ;;  %v325_v13 = vmul.f32 0.2, %v293_v11  ;;  %vm313_vm15 = vcmp.ge.f32.partialorder %v297_v12, 0.0  ;;  %v329_v14 = vmul.f32 0.2, %v297_v12 }
  0xc2   :  { %v341_v15 = vsel %vm309_vm14, %v293_v11, %v325_v13  ;;  %v345_v17 = vsel %vm313_vm15, %v297_v12, %v329_v14 }
  0xc3   :  { %357 = vst [vmem:[%s611_s3 + $0x58] sm:$0xff] %v341_v15 }
  0xc4   :  { %361 = vst [vmem:[%s611_s3 + $0x78] sm:$0xff] %v345_v17 }

// kernel: encoder_forward.4
= control target key start
LH: loop header
LB: loop body
LE: loop exit
PB: predicated region body
PF: predicated region fallthrough
CT: control target
= control target key end

     0   :  { %s292_s1 = inlined_call_operand.vmem [shape: bf16[128,128], index: 1, kind: input, shape index: {}]   ;;  %s293_s2 = inlined_call_operand.vmem [shape: f32[1,128], index: 2, kind: input, shape index: {}]   ;;  %s294_s0 = inlined_call_operand.vmem [shape: bf16[32,128], index: 0, kind: input, shape index: {}]   ;;  %s295_s3 = inlined_call_operand.vmem [shape: f32[32,128], index: 3, kind: output, shape index: {}]  }
   0x1   :  { %v217_v0 = vld [vmem:[%s292_s1 + $0x38] sm:$0xff]  ;;  %v216_v1 = vld [vmem:[%s292_s1 + $0x30] sm:$0xff]  ;;  %v215_v2 = vld [vmem:[%s292_s1 + $0x28] sm:$0xff] }
   0x2   :  { %106 = vmatpush.bf16.msra.mxu0 %v217_v0  ;;  %218 = vmatpush.bf16.msra.mxu1 %v217_v0  ;;  %v214_v3 = vld [vmem:[%s292_s1 + $0x20] sm:$0xff]  ;;  %v213_v4 = vld [vmem:[%s292_s1 + $0x18] sm:$0xff]  ;;  %v212_v5 = vld [vmem:[%s292_s1 + $0x10] sm:$0xff] }
   0x3   :  { %v211_v6 = vld [vmem:[%s292_s1 + $0x8] sm:$0xff]  ;;  %v210_v7 = vld [vmem:[%s292_s1] sm:$0xff] }
   0x4   :  { %v208_v8 = vld [vmem:[%s294_s0] sm:$0xff]  ;;  %v209_v9 = vld [vmem:[%s294_s0 + $0x8] sm:$0xff] }
   0x5   :  { %v226_v10 = vld [vmem:[%s293_s2] ss:$0 sm:$0xff] }
   0x6   :  { %107 = vmatpush.bf16.msra.mxu0 %v216_v1  ;;  %219 = vmatpush.bf16.msra.mxu1 %v216_v1 }
   0xa   :  { %108 = vmatpush.bf16.msra.mxu0 %v215_v2  ;;  %220 = vmatpush.bf16.msra.mxu1 %v215_v2 }
   0xe   :  { %109 = vmatpush.bf16.msra.mxu0 %v214_v3  ;;  %221 = vmatpush.bf16.msra.mxu1 %v214_v3 }
  0x12   :  { %110 = vmatpush.bf16.msra.mxu0 %v213_v4  ;;  %222 = vmatpush.bf16.msra.mxu1 %v213_v4 }
  0x16   :  { %111 = vmatpush.bf16.msra.mxu0 %v212_v5  ;;  %223 = vmatpush.bf16.msra.mxu1 %v212_v5 }
  0x1a   :  { %112 = vmatpush.bf16.msra.mxu0 %v211_v6  ;;  %224 = vmatpush.bf16.msra.mxu1 %v211_v6 }
  0x1e   :  { %113 = vmatpush.bf16.msra.mxu0 %v210_v7  ;;  %225 = vmatpush.bf16.msra.mxu1 %v210_v7 }
  0x21   :  { %114 = vmatmul.bf16.vlgmr.msra.gmra.mxu0 %v208_v8  ;;  %119 = vmatmul.bf16.vlgmr.msra.gmra.mxu1 %v209_v9 }
  0x9e   :  { %v115_v11 = vpop.f32.mrf.mxu0  ;;  %v120_v12 = vpop.f32.mrf.mxu1 }
  0x9f   :  { %v144_v13 = vadd.f32 %v226_v10, %v115_v11  ;;  %v146_v14 = vadd.f32 %v226_v10, %v120_v12 }
  0xa1   :  { %vm148_vm0 = vcmp.ge.f32.partialorder %v144_v13, 0.0  ;;  %v152_v15 = vmul.f32 0.2, %v144_v13  ;;  %vm150_vm1 = vcmp.ge.f32.partialorder %v146_v14, 0.0  ;;  %v154_v16 = vmul.f32 0.2, %v146_v14 }
  0xa3   :  { %v156_v17 = vsel %vm148_vm0, %v144_v13, %v152_v15  ;;  %v158_v18 = vsel %vm150_vm1, %v146_v14, %v154_v16 }
  0xa4   :  { %160 = vst [vmem:[%s295_s3] sm:$0xff] %v156_v17 }
  0xa5   :  { %162 = vst [vmem:[%s295_s3 + $0x10] sm:$0xff] %v158_v18 }
  0xa6   :  { %v117_v19 = vpop.f32.mrf.mxu0  ;;  %v122_v20 = vpop.f32.mrf.mxu1 }
  0xa7   :  { %v145_v21 = vadd.f32 %v226_v10, %v117_v19  ;;  %v147_v22 = vadd.f32 %v226_v10, %v122_v20 }
  0xa9   :  { %vm149_vm2 = vcmp.ge.f32.partialorder %v145_v21, 0.0  ;;  %v153_v23 = vmul.f32 0.2, %v145_v21  ;;  %vm151_vm3 = vcmp.ge.f32.partialorder %v147_v22, 0.0  ;;  %v155_v24 = vmul.f32 0.2, %v147_v22 }
  0xab   :  { %v157_v25 = vsel %vm149_vm2, %v145_v21, %v153_v23  ;;  %v159_v26 = vsel %vm151_vm3, %v147_v22, %v155_v24 }
  0xac   :  { %161 = vst [vmem:[%s295_s3 + $0x8] sm:$0xff] %v157_v25 }
  0xad   :  { %163 = vst [vmem:[%s295_s3 + $0x18] sm:$0xff] %v159_v26 }

// kernel: encoder_forward.5
= control target key start
LH: loop header
LB: loop body
LE: loop exit
PB: predicated region body
PF: predicated region fallthrough
CT: control target
= control target key end

     0   :  { %s391_s1 = inlined_call_operand.vmem [shape: bf16[256,128], index: 1, kind: input, shape index: {}]   ;;  %s392_s0 = inlined_call_operand.vmem [shape: bf16[16,256], index: 0, kind: input, shape index: {}]   ;;  %s393_s2 = inlined_call_operand.vmem [shape: f32[1,128], index: 2, kind: input, shape index: {}]   ;;  %s394_s3 = inlined_call_operand.vmem [shape: f32[16,128], index: 3, kind: output, shape index: {}]  }
   0x1   :  { %v292_v0 = vld [vmem:[%s391_s1 + $0x38] sm:$0xff]  ;;  %v291_v2 = vld [vmem:[%s391_s1 + $0x30] sm:$0xff]  ;;  %v290_v4 = vld [vmem:[%s391_s1 + $0x28] sm:$0xff] }
   0x2   :  { %v300_v1 = vld [vmem:[%s391_s1 + $0x78] sm:$0xff]  ;;  %162 = vmatpush.bf16.msra.mxu0 %v292_v0  ;;  %v299_v3 = vld [vmem:[%s391_s1 + $0x70] sm:$0xff]  ;;  %v298_v5 = vld [vmem:[%s391_s1 + $0x68] sm:$0xff] }
   0x3   :  { %176 = vmatpush.bf16.msra.mxu1 %v300_v1  ;;  %v289_v6 = vld [vmem:[%s391_s1 + $0x20] sm:$0xff]  ;;  %v288_v8 = vld [vmem:[%s391_s1 + $0x18] sm:$0xff]  ;;  %v287_v10 = vld [vmem:[%s391_s1 + $0x10] sm:$0xff] }
   0x4   :  { %v297_v7 = vld [vmem:[%s391_s1 + $0x60] sm:$0xff]  ;;  %v296_v9 = vld [vmem:[%s391_s1 + $0x58] sm:$0xff]  ;;  %v295_v11 = vld [vmem:[%s391_s1 + $0x50] sm:$0xff] }
   0x5   :  { %v286_v12 = vld [vmem:[%s391_s1 + $0x8] sm:$0xff]  ;;  %v285_v14 = vld [vmem:[%s391_s1] sm:$0xff] }
   0x6   :  { %163 = vmatpush.bf16.msra.mxu0 %v291_v2  ;;  %v294_v13 = vld [vmem:[%s391_s1 + $0x48] sm:$0xff]  ;;  %v293_v15 = vld [vmem:[%s391_s1 + $0x40] sm:$0xff] }
   0x7   :  { %177 = vmatpush.bf16.msra.mxu1 %v299_v3  ;;  %v213_v16 = vld [vmem:[%s392_s0] sm:$0xf]  ;;  %v284_v17 = vld [vmem:[%s392_s0 + $0x4] sm:$0xf0]  ;;  %v283_v18 = vld [vmem:[%s392_s0 + $0x4] sm:$0xf] }
   0x8   :  { %v215_v19 = vld [vmem:[%s392_s0 + $0x8] sm:$0xf0]  ;;  %v214_v20 = vor.u32 %v284_v17, %v213_v16  ;;  %v301_v22 = vld [vmem:[%s393_s2] ss:$0 sm:$0xff] }
   0x9   :  { %v218_v21 = vor.u32 %v283_v18, %v215_v19 }
   0xa   :  { %164 = vmatpush.bf16.msra.mxu0 %v290_v4 }
   0xb   :  { %178 = vmatpush.bf16.msra.mxu1 %v298_v5 }
   0xe   :  { %165 = vmatpush.bf16.msra.mxu0 %v289_v6 }
   0xf   :  { %179 = vmatpush.bf16.msra.mxu1 %v297_v7 }
  0x12   :  { %166 = vmatpush.bf16.msra.mxu0 %v288_v8 }
  0x13   :  { %180 = vmatpush.bf16.msra.mxu1 %v296_v9 }
  0x16   :  { %167 = vmatpush.bf16.msra.mxu0 %v287_v10 }
  0x17   :  { %181 = vmatpush.bf16.msra.mxu1 %v295_v11 }
  0x1a   :  { %168 = vmatpush.bf16.msra.mxu0 %v286_v12 }
  0x1b   :  { %182 = vmatpush.bf16.msra.mxu1 %v294_v13 }
  0x1e   :  { %169 = vmatpush.bf16.msra.mxu0 %v285_v14 }
  0x1f   :  { %183 = vmatpush.bf16.msra.mxu1 %v293_v15 }
  0x21   :  { %170 = vmatmul.bf16.vlgmr.msra.gmra.mxu0 %v214_v20 }
  0x22   :  { %184 = vmatmul.bf16.vlgmr.msra.gmra.mxu1 %v218_v21 }
  0x9e   :  { %v171_v23 = vpop.f32.mrf.mxu0 }
  0x9f   :  { %v185_v24 = vpop.f32.mrf.mxu1 }
  0xa0   :  { %v186_v25 = vadd.f32 %v185_v24, %v171_v23 }
  0xa2   :  { %v203_v26 = vadd.f32 %v301_v22, %v186_v25 }
  0xa4   :  { %205 = vst [vmem:[%s394_s3] sm:$0xff] %v203_v26 }
  0xa6   :  { %v173_v27 = vpop.f32.mrf.mxu0 }
  0xa7   :  { %v187_v28 = vpop.f32.mrf.mxu1 }
  0xa8   :  { %v188_v29 = vadd.f32 %v187_v28, %v173_v27 }
  0xaa   :  { %v204_v30 = vadd.f32 %v301_v22, %v188_v29 }
  0xac   :  { %206 = vst [vmem:[%s394_s3 + $0x8] sm:$0xff] %v204_v30 }

</bundles_post_ra>
